<compile_context>
chip_gen: v6e
topology: v6e:2x2x1
jax: 0.10.0
libtpu: 0.0.40
codegen_flags: <defaults>
</compile_context>

<pallas_src>
import functools

import jax
import jax.numpy as jnp
from jax.experimental import pallas as pl
from jax.experimental.pallas import tpu as pltpu


def _conv3d_aware2_kernel(
    x_ud_ref, x_lr_ref, raw_ref,
    wud_ref, bud_ref, wlr_ref, blr_ref,
    wc_ref, bc_ref, til_ref, rep_ref,
    out_ref, pad_ref,
    *, C, CP, H, W, R):
  f32 = jnp.float32
  Wrow = W + 2                      # padded row width in the flat layout
  NF = H * Wrow                     # flattened output width (2 halo cols per row)
  Lflat = pad_ref.shape[1]
  n_chunks = H // R
  p = pl.program_id(0)

  # ---- batched 1D convs: one MXU matmul each (K = C*H / C*W, N = 3W / 3H) ----
  ud_all = jnp.dot(wud_ref[...], x_ud_ref[...],
                   preferred_element_type=f32) + bud_ref[...]          # (C, 3W)
  lr_all = jnp.dot(wlr_ref[...], x_lr_ref[...],
                   preferred_element_type=f32) + blr_ref[...]          # (C, 3H)

  # ---- zero only the never-overwritten parts of the padded scratch ----
  pad_ref[:, 0:Wrow] = jnp.zeros((3 * CP, Wrow), f32)                  # top zero row
  pad_ref[:, (H + 1) * Wrow:Lflat] = jnp.zeros(
      (3 * CP, Lflat - (H + 1) * Wrow), f32)                           # bottom + slack
  if C < CP:                                                           # padded channels
    for blk in range(3):
      pad_ref[blk * CP + C:(blk + 1) * CP, :] = jnp.zeros((CP - C, Lflat), f32)

  # flat layout: composed_pad[c, hp, wp] -> pad_ref[block*CP + c, hp*Wrow + wp]
  def fill_raw(blk):                       # raw plane, wrapper-prepadded/flattened
    pad_ref[blk * CP:blk * CP + C, Wrow:Wrow + NF] = raw_ref[0]

  def fill_rows(blk, u):                   # u: (C, W), broadcast along H
    tile = jnp.dot(u, til_ref[...], preferred_element_type=f32)        # (C, R*Wrow)
    for r in range(n_chunks):
      pad_ref[blk * CP:blk * CP + C,
              (r * R + 1) * Wrow:(r * R + 1 + R) * Wrow] = tile

  def fill_cols(blk, m):                   # m: (C, H), broadcast along W
    for r in range(n_chunks):
      chunk = jnp.dot(m[:, r * R:(r + 1) * R], rep_ref[...],
                      preferred_element_type=f32)                      # (C, R*Wrow)
      pad_ref[blk * CP:blk * CP + C,
              (r * R + 1) * Wrow:(r * R + 1 + R) * Wrow] = chunk

  @pl.when(p == 0)   # xoy_ = [xoy, ud(xoz) expand H, ud(yoz) expand+permute]
  def _():
    fill_raw(0)
    fill_rows(1, ud_all[:, W:2 * W])
    fill_cols(2, ud_all[:, 2 * W:3 * W])

  @pl.when(p == 1)   # xoz_ = [ud(xoy) expand H, xoz, lr(yoz) expand W]
  def _():
    fill_rows(0, ud_all[:, 0:W])
    fill_raw(1)
    fill_cols(2, lr_all[:, 2 * H:3 * H])

  @pl.when(p == 2)   # yoz_ = [lr(xoy) expand+permute, lr(xoz) expand W, yoz]
  def _():
    fill_rows(0, lr_all[:, 0:H])
    fill_cols(1, lr_all[:, H:2 * H])
    fill_raw(2)

  # ---- 3x3 conv (padding=1): 9 whole-plane matmuls (C,3CP) @ (3CP, H*Wrow) ----
  acc = jnp.dot(wc_ref[0, 0], pad_ref[:, 0:NF], preferred_element_type=f32)
  for k in range(1, 9):
    kh, kw = divmod(k, 3)
    s = kh * Wrow + kw
    acc = acc + jnp.dot(wc_ref[0, k], pad_ref[:, s:s + NF],
                        preferred_element_type=f32)
  out_ref[0] = acc + bc_ref[0]             # bias added once, lane-dense store


def conv3d_aware2_forward(triplane, params):
  (wud, bud, wlr, blr, w1, b1, w2, b2, w3, b3) = params
  B, C, H, W3 = triplane.shape
  assert B == 1
  W = W3 // 3
  assert H == W, "module semantics (permute + channel cat) require H == W"
  CP = -(-C // 8) * 8                      # channel block rounded to a sublane tile
  Wrow = W + 2
  NF = H * Wrow
  Lflat = (H + 2) * Wrow + 2               # +2 so halo-column taps stay in bounds
  R = 8 if H % 8 == 0 else 1               # rows per broadcast-fill chunk

  # --- glue: plane split + kernel-friendly layouts (pure XLA, outside kernel) ---
  tri = jnp.stack([triplane[:, :, :, :W], triplane[:, :, :, W:2 * W],
                   triplane[:, :, :, 2 * W:]], 0).reshape(3, C, H, W)
  x_ud = triplane.reshape(C * H, 3 * W)                       # rows c*H+h, cols p*W+w
  x_lr = jnp.transpose(tri, (1, 3, 0, 2)).reshape(C * W, 3 * H)  # rows c*W+w, cols p*H+h
  raw_flat = jnp.pad(tri, ((0, 0), (0, 0), (0, 0), (1, 1))).reshape(3, C, NF)

  # 1D conv weights flattened so each conv is a single deep-K matmul.
  wud_m = wud.reshape(C, C * H)
  wlr_m = wlr.reshape(C, C * W)
  bud_k = bud.reshape(C, 1)
  blr_k = blr.reshape(C, 1)

  def pack_w(w):   # (C, 3C, 3, 3) -> (9, C, 3*CP), each C-block zero-padded to CP
    wt = jnp.transpose(w, (2, 3, 0, 1)).reshape(9, C, 3 * C)
    out = jnp.zeros((9, C, 3 * CP), w.dtype)
    for blk in range(3):
      out = out.at[:, :, blk * CP:blk * CP + C].set(wt[:, :, blk * C:(blk + 1) * C])
    return out

  wc_all = jnp.stack([pack_w(w1), pack_w(w2), pack_w(w3)], 0)          # (3, 9, C, 3CP)
  bc_all = jnp.stack([b1.reshape(C, 1), b2.reshape(C, 1), b3.reshape(C, 1)], 0)

  # Small constant expansion matrices: materialize the broadcast channel blocks
  # directly in the flat padded layout with plain matmuls (no in-kernel reshape).
  wcol = jnp.arange(W)
  til = jnp.zeros((W, R * Wrow), jnp.float32)      # (C,W) @ til -> tile over R rows
  rep = jnp.zeros((R, R * Wrow), jnp.float32)      # (C,R) @ rep -> repeat over W cols
  for i in range(R):
    til = til.at[wcol, i * Wrow + wcol + 1].set(1.0)
    rep = rep.at[i, i * Wrow + 1:i * Wrow + 1 + W].set(1.0)

  kernel = functools.partial(_conv3d_aware2_kernel, C=C, CP=CP, H=H, W=W, R=R)

  operands = (x_ud, x_lr, raw_flat, wud_m, bud_k, wlr_m, blr_k,
              wc_all, bc_all, til, rep)
  total_bytes = sum(int(a.size) * a.dtype.itemsize for a in operands)
  total_bytes += 3 * C * NF * 4 + 3 * CP * Lflat * 4
  vmem_limit = int(min(64 * 2**20, max(16 * 2**20, 3 * total_bytes)))

  grid_spec = pltpu.PrefetchScalarGridSpec(
      num_scalar_prefetch=0,
      grid=(3,),                                   # one grid step per output plane
      in_specs=[
          pl.BlockSpec((C * H, 3 * W), lambda p: (0, 0)),
          pl.BlockSpec((C * W, 3 * H), lambda p: (0, 0)),
          pl.BlockSpec((1, C, NF), lambda p: (p, 0, 0)),
          pl.BlockSpec((C, C * H), lambda p: (0, 0)),
          pl.BlockSpec((C, 1), lambda p: (0, 0)),
          pl.BlockSpec((C, C * W), lambda p: (0, 0)),
          pl.BlockSpec((C, 1), lambda p: (0, 0)),
          pl.BlockSpec((1, 9, C, 3 * CP), lambda p: (p, 0, 0, 0)),
          pl.BlockSpec((1, C, 1), lambda p: (p, 0, 0)),
          pl.BlockSpec((W, R * Wrow), lambda p: (0, 0)),
          pl.BlockSpec((R, R * Wrow), lambda p: (0, 0)),
      ],
      out_specs=pl.BlockSpec((1, C, NF), lambda p: (p, 0, 0)),
      scratch_shapes=[pltpu.VMEM((3 * CP, Lflat), jnp.float32)],
  )

  out = pl.pallas_call(
      kernel,
      out_shape=jax.ShapeDtypeStruct((3, C, NF), jnp.float32),
      grid_spec=grid_spec,
      compiler_params=pltpu.CompilerParams(
          dimension_semantics=("parallel",),
          vmem_limit_bytes=vmem_limit),
  )(*operands)

  out = out.reshape(3, C, H, Wrow)[..., :W]          # drop the 2 halo columns per row
  h = jnp.transpose(out, (1, 2, 0, 3)).reshape(C, H, 3 * W)
  return h[None]                                     # (1, C, H, 3W)


# ----------------------------- pure-JAX reference -----------------------------
def _conv(x, w, b, pad):
  y = jax.lax.conv_general_dilated(
      x, w, (1, 1), pad, dimension_numbers=("NCHW", "OIHW", "NCHW"),
      precision=jax.lax.Precision.HIGHEST)
  return y + b[None, :, None, None]


def reference_forward(triplane, params):
  (wud, bud, wlr, blr, w1, b1, w2, b2, w3, b3) = params
  B, C, H, W3 = triplane.shape
  W = W3 // 3
  tp = jnp.stack([triplane[:, :, :, :W], triplane[:, :, :, W:2 * W],
                  triplane[:, :, :, 2 * W:]], 0).reshape(3, C, H, W)
  xoy, xoz, yoz = tp[0][None], tp[1][None], tp[2][None]
  ud = lambda x: _conv(x, wud, bud, "VALID")             # (1, C, 1, W)
  lr = lambda x: _conv(x, wlr, blr, "VALID")             # (1, C, H, 1)
  bc = lambda y: jnp.broadcast_to(y, (1, C, H, W))
  xoy2ox, xoz2ox, yoz2oy = bc(ud(xoy)), bc(ud(xoz)), bc(ud(yoz))
  xoy2oy, xoz2oz, yoz2oz = bc(lr(xoy)), bc(lr(xoz)), bc(lr(yoz))
  xoy_ = jnp.concatenate([xoy, xoz2ox, jnp.transpose(yoz2oy, (0, 1, 3, 2))], 1)
  xoz_ = jnp.concatenate([xoy2ox, xoz, yoz2oz], 1)
  yoz_ = jnp.concatenate([jnp.transpose(xoy2oy, (0, 1, 3, 2)), xoz2oz, yoz], 1)
  p1 = [(1, 1), (1, 1)]
  xoy_ = _conv(xoy_, w1, b1, p1)
  xoz_ = _conv(xoz_, w2, b2, p1)
  yoz_ = _conv(yoz_, w3, b3, p1)
  return jnp.concatenate([xoy_, xoz_, yoz_], -1)


def init_params(key, C, H, W):
  ks = jax.random.split(key, 10)
  def u(k, shape, fan_in):
    b = 1.0 / (fan_in ** 0.5)
    return jax.random.uniform(k, shape, jnp.float32, -b, b)
  wud = u(ks[0], (C, C, H, 1), C * H);      bud = u(ks[1], (C,), C * H)
  wlr = u(ks[2], (C, C, 1, W), C * W);      blr = u(ks[3], (C,), C * W)
  w1 = u(ks[4], (C, 3 * C, 3, 3), 27 * C);  b1 = u(ks[5], (C,), 27 * C)
  w2 = u(ks[6], (C, 3 * C, 3, 3), 27 * C);  b2 = u(ks[7], (C,), 27 * C)
  w3 = u(ks[8], (C, 3 * C, 3, 3), 27 * C);  b3 = u(ks[9], (C,), 27 * C)
  return (wud, bud, wlr, blr, w1, b1, w2, b2, w3, b3)


if __name__ == "__main__":
  C, H, W = 4, 8, 8
  key = jax.random.PRNGKey(0)
  kx, kp = jax.random.split(key)
  x = jax.random.normal(kx, (1, C, H, 3 * W), jnp.float32)
  params = init_params(kp, C, H, W)

  out = jax.block_until_ready(conv3d_aware2_forward(x, params))
  ref = jax.block_until_ready(reference_forward(x, params))

  assert out.shape == (1, C, H, 3 * W), out.shape
  if not jnp.allclose(out, ref, rtol=2e-3, atol=2e-3):
    raise AssertionError(
        f"kernel/reference mismatch, max abs err = {jnp.max(jnp.abs(out - ref))}")
  print("KERNEL_OK")
</pallas_src>

<mosaic_0001>
module attributes {stable_mosaic.version = 11 : i64} {
  func.func @_conv3d_aware2_kernel(%arg0: i32, %arg1: memref<32x24xf32, #tpu.memory_space<vmem>>, %arg2: memref<32x24xf32, #tpu.memory_space<vmem>>, %arg3: memref<1x4x80xf32, #tpu.memory_space<vmem>>, %arg4: memref<4x32xf32, #tpu.memory_space<vmem>>, %arg5: memref<4x1xf32, #tpu.memory_space<vmem>>, %arg6: memref<4x32xf32, #tpu.memory_space<vmem>>, %arg7: memref<4x1xf32, #tpu.memory_space<vmem>>, %arg8: memref<1x9x4x24xf32, #tpu.memory_space<vmem>>, %arg9: memref<1x4x1xf32, #tpu.memory_space<vmem>>, %arg10: memref<8x80xf32, #tpu.memory_space<vmem>>, %arg11: memref<8x80xf32, #tpu.memory_space<vmem>>, %arg12: memref<1x4x80xf32, #tpu.memory_space<vmem>>, %arg13: memref<24x102xf32, #tpu.memory_space<vmem>>) attributes {dimension_semantics = [#tpu.dimension_semantics<parallel>], iteration_bounds = array<i64: 3>, scalar_prefetch = 0 : i64, scratch_operands = 1 : i64, tpu.core_type = #tpu.core_type<tc>, window_params = [{pipeline_mode = #tpu.pipeline_mode<synchronous>, transform_indices = @transform_0, window_bounds = array<i64: 32, 24>}, {pipeline_mode = #tpu.pipeline_mode<synchronous>, transform_indices = @transform_1, window_bounds = array<i64: 32, 24>}, {transform_indices = @transform_2, window_bounds = array<i64: 1, 4, 80>}, {pipeline_mode = #tpu.pipeline_mode<synchronous>, transform_indices = @transform_3, window_bounds = array<i64: 4, 32>}, {pipeline_mode = #tpu.pipeline_mode<synchronous>, transform_indices = @transform_4, window_bounds = array<i64: 4, 1>}, {pipeline_mode = #tpu.pipeline_mode<synchronous>, transform_indices = @transform_5, window_bounds = array<i64: 4, 32>}, {pipeline_mode = #tpu.pipeline_mode<synchronous>, transform_indices = @transform_6, window_bounds = array<i64: 4, 1>}, {transform_indices = @transform_7, window_bounds = array<i64: 1, 9, 4, 24>}, {transform_indices = @transform_8, window_bounds = array<i64: 1, 4, 1>}, {pipeline_mode = #tpu.pipeline_mode<synchronous>, transform_indices = @transform_9, window_bounds = array<i64: 8, 80>}, {pipeline_mode = #tpu.pipeline_mode<synchronous>, transform_indices = @transform_10, window_bounds = array<i64: 8, 80>}, {transform_indices = @transform_11, window_bounds = array<i64: 1, 4, 80>}]} {
    %c0 = arith.constant 0 : index
    %c0_0 = arith.constant 0 : index
    %0 = vector.load %arg4[%c0, %c0_0] : memref<4x32xf32, #tpu.memory_space<vmem>>, vector<4x32xf32>
    %c0_1 = arith.constant 0 : index
    %c0_2 = arith.constant 0 : index
    %1 = vector.load %arg1[%c0_1, %c0_2] : memref<32x24xf32, #tpu.memory_space<vmem>>, vector<32x24xf32>
    %cst = arith.constant dense<0.000000e+00> : vector<4x24xf32>
    %2 = tpu.matmul %0, %1, %cst {dimension_numbers = #tpu.dot_dimension_numbers<[1], [0], [0], [1], [0, 0, 1, 1], [], []>} : vector<4x32xf32>, vector<32x24xf32>, vector<4x24xf32> -> vector<4x24xf32>
    %c0_3 = arith.constant 0 : index
    %c0_4 = arith.constant 0 : index
    %3 = vector.load %arg5[%c0_3, %c0_4] : memref<4x1xf32, #tpu.memory_space<vmem>>, vector<4x1xf32>
    %4 = vector.broadcast %3 : vector<4x1xf32> to vector<4x24xf32>
    %5 = arith.addf %2, %4 : vector<4x24xf32>
    %c0_5 = arith.constant 0 : index
    %c0_6 = arith.constant 0 : index
    %6 = vector.load %arg6[%c0_5, %c0_6] : memref<4x32xf32, #tpu.memory_space<vmem>>, vector<4x32xf32>
    %c0_7 = arith.constant 0 : index
    %c0_8 = arith.constant 0 : index
    %7 = vector.load %arg2[%c0_7, %c0_8] : memref<32x24xf32, #tpu.memory_space<vmem>>, vector<32x24xf32>
    %cst_9 = arith.constant dense<0.000000e+00> : vector<4x24xf32>
    %8 = tpu.matmul %6, %7, %cst_9 {dimension_numbers = #tpu.dot_dimension_numbers<[1], [0], [0], [1], [0, 0, 1, 1], [], []>} : vector<4x32xf32>, vector<32x24xf32>, vector<4x24xf32> -> vector<4x24xf32>
    %c0_10 = arith.constant 0 : index
    %c0_11 = arith.constant 0 : index
    %9 = vector.load %arg7[%c0_10, %c0_11] : memref<4x1xf32, #tpu.memory_space<vmem>>, vector<4x1xf32>
    %10 = vector.broadcast %9 : vector<4x1xf32> to vector<4x24xf32>
    %11 = arith.addf %8, %10 : vector<4x24xf32>
    %cst_12 = arith.constant 0.000000e+00 : f32
    %12 = vector.broadcast %cst_12 : f32 to vector<24x10xf32>
    %c0_13 = arith.constant 0 : index
    %c0_14 = arith.constant 0 : index
    %13 = vector.load %arg13[%c0_13, %c0_14] : memref<24x102xf32, #tpu.memory_space<vmem>>, vector<24x10xf32>
    tpu.vector_store %arg13[%c0_13, %c0_14], %12 {strides = array<i32>} : memref<24x102xf32, #tpu.memory_space<vmem>>, vector<24x10xf32>,
    %cst_15 = arith.constant 0.000000e+00 : f32
    %14 = vector.broadcast %cst_15 : f32 to vector<24x12xf32>
    %c0_16 = arith.constant 0 : index
    %c90 = arith.constant 90 : index
    %15 = vector.load %arg13[%c0_16, %c90] : memref<24x102xf32, #tpu.memory_space<vmem>>, vector<24x12xf32>
    tpu.vector_store %arg13[%c0_16, %c90], %14 {strides = array<i32>} : memref<24x102xf32, #tpu.memory_space<vmem>>, vector<24x12xf32>,
    %cst_17 = arith.constant 0.000000e+00 : f32
    %16 = vector.broadcast %cst_17 : f32 to vector<4x102xf32>
    %c4 = arith.constant 4 : index
    %c0_18 = arith.constant 0 : index
    %17 = vector.load %arg13[%c4, %c0_18] : memref<24x102xf32, #tpu.memory_space<vmem>>, vector<4x102xf32>
    tpu.vector_store %arg13[%c4, %c0_18], %16 {strides = array<i32>} : memref<24x102xf32, #tpu.memory_space<vmem>>, vector<4x102xf32>,
    %cst_19 = arith.constant 0.000000e+00 : f32
    %18 = vector.broadcast %cst_19 : f32 to vector<4x102xf32>
    %c12 = arith.constant 12 : index
    %c0_20 = arith.constant 0 : index
    %19 = vector.load %arg13[%c12, %c0_20] : memref<24x102xf32, #tpu.memory_space<vmem>>, vector<4x102xf32>
    tpu.vector_store %arg13[%c12, %c0_20], %18 {strides = array<i32>} : memref<24x102xf32, #tpu.memory_space<vmem>>, vector<4x102xf32>,
    %cst_21 = arith.constant 0.000000e+00 : f32
    %20 = vector.broadcast %cst_21 : f32 to vector<4x102xf32>
    %c20 = arith.constant 20 : index
    %c0_22 = arith.constant 0 : index
    %21 = vector.load %arg13[%c20, %c0_22] : memref<24x102xf32, #tpu.memory_space<vmem>>, vector<4x102xf32>
    tpu.vector_store %arg13[%c20, %c0_22], %20 {strides = array<i32>} : memref<24x102xf32, #tpu.memory_space<vmem>>, vector<4x102xf32>,
    %c0_i32 = arith.constant 0 : i32
    %22 = arith.cmpi eq, %arg0, %c0_i32 : i32
    %23 = arith.extui %22 : i1 to i32
    %c0_i32_23 = arith.constant 0 : i32
    %24 = arith.cmpi ne, %23, %c0_i32_23 : i32
    scf.if %24 {
      %c0_84 = arith.constant 0 : index
      %c0_85 = arith.constant 0 : index
      %c0_86 = arith.constant 0 : index
      %82 = vector.load %arg3[%c0_84, %c0_85, %c0_86] : memref<1x4x80xf32, #tpu.memory_space<vmem>>, vector<1x4x80xf32>
      %83 = vector.shape_cast %82 : vector<1x4x80xf32> to vector<4x80xf32>
      %c0_87 = arith.constant 0 : index
      %c10_88 = arith.constant 10 : index
      %84 = vector.load %arg13[%c0_87, %c10_88] : memref<24x102xf32, #tpu.memory_space<vmem>>, vector<4x80xf32>
      tpu.vector_store %arg13[%c0_87, %c10_88], %83 {strides = array<i32>} : memref<24x102xf32, #tpu.memory_space<vmem>>, vector<4x80xf32>,
      %85 = vector.extract_strided_slice %5 {offsets = [0, 8], sizes = [4, 8], strides = [1, 1]} : vector<4x24xf32> to vector<4x8xf32>
      %c0_89 = arith.constant 0 : index
      %c0_90 = arith.constant 0 : index
      %86 = vector.load %arg10[%c0_89, %c0_90] : memref<8x80xf32, #tpu.memory_space<vmem>>, vector<8x80xf32>
      %cst_91 = arith.constant dense<0.000000e+00> : vector<4x80xf32>
      %87 = tpu.matmul %85, %86, %cst_91 {dimension_numbers = #tpu.dot_dimension_numbers<[1], [0], [0], [1], [0, 0, 1, 1], [], []>} : vector<4x8xf32>, vector<8x80xf32>, vector<4x80xf32> -> vector<4x80xf32>
      %c8_92 = arith.constant 8 : index
      %c10_93 = arith.constant 10 : index
      %88 = vector.load %arg13[%c8_92, %c10_93] : memref<24x102xf32, #tpu.memory_space<vmem>>, vector<4x80xf32>
      tpu.vector_store %arg13[%c8_92, %c10_93], %87 {strides = array<i32>} : memref<24x102xf32, #tpu.memory_space<vmem>>, vector<4x80xf32>,
      %89 = vector.extract_strided_slice %5 {offsets = [0, 16], sizes = [4, 8], strides = [1, 1]} : vector<4x24xf32> to vector<4x8xf32>
      %c0_94 = arith.constant 0 : index
      %c0_95 = arith.constant 0 : index
      %90 = vector.load %arg11[%c0_94, %c0_95] : memref<8x80xf32, #tpu.memory_space<vmem>>, vector<8x80xf32>
      %cst_96 = arith.constant dense<0.000000e+00> : vector<4x80xf32>
      %91 = tpu.matmul %89, %90, %cst_96 {dimension_numbers = #tpu.dot_dimension_numbers<[1], [0], [0], [1], [0, 0, 1, 1], [], []>} : vector<4x8xf32>, vector<8x80xf32>, vector<4x80xf32> -> vector<4x80xf32>
      %c16 = arith.constant 16 : index
      %c10_97 = arith.constant 10 : index
      %92 = vector.load %arg13[%c16, %c10_97] : memref<24x102xf32, #tpu.memory_space<vmem>>, vector<4x80xf32>
      tpu.vector_store %arg13[%c16, %c10_97], %91 {strides = array<i32>} : memref<24x102xf32, #tpu.memory_space<vmem>>, vector<4x80xf32>,
    } else {
    }
    %c1_i32 = arith.constant 1 : i32
    %25 = arith.cmpi eq, %arg0, %c1_i32 : i32
    %26 = arith.extui %25 : i1 to i32
    %c0_i32_24 = arith.constant 0 : i32
    %27 = arith.cmpi ne, %26, %c0_i32_24 : i32
    scf.if %27 {
      %82 = vector.extract_strided_slice %5 {offsets = [0, 0], sizes = [4, 8], strides = [1, 1]} : vector<4x24xf32> to vector<4x8xf32>
      %c0_84 = arith.constant 0 : index
      %c0_85 = arith.constant 0 : index
      %83 = vector.load %arg10[%c0_84, %c0_85] : memref<8x80xf32, #tpu.memory_space<vmem>>, vector<8x80xf32>
      %cst_86 = arith.constant dense<0.000000e+00> : vector<4x80xf32>
      %84 = tpu.matmul %82, %83, %cst_86 {dimension_numbers = #tpu.dot_dimension_numbers<[1], [0], [0], [1], [0, 0, 1, 1], [], []>} : vector<4x8xf32>, vector<8x80xf32>, vector<4x80xf32> -> vector<4x80xf32>
      %c0_87 = arith.constant 0 : index
      %c10_88 = arith.constant 10 : index
      %85 = vector.load %arg13[%c0_87, %c10_88] : memref<24x102xf32, #tpu.memory_space<vmem>>, vector<4x80xf32>
      tpu.vector_store %arg13[%c0_87, %c10_88], %84 {strides = array<i32>} : memref<24x102xf32, #tpu.memory_space<vmem>>, vector<4x80xf32>,
      %c0_89 = arith.constant 0 : index
      %c0_90 = arith.constant 0 : index
      %c0_91 = arith.constant 0 : index
      %86 = vector.load %arg3[%c0_89, %c0_90, %c0_91] : memref<1x4x80xf32, #tpu.memory_space<vmem>>, vector<1x4x80xf32>
      %87 = vector.shape_cast %86 : vector<1x4x80xf32> to vector<4x80xf32>
      %c8_92 = arith.constant 8 : index
      %c10_93 = arith.constant 10 : index
      %88 = vector.load %arg13[%c8_92, %c10_93] : memref<24x102xf32, #tpu.memory_space<vmem>>, vector<4x80xf32>
      tpu.vector_store %arg13[%c8_92, %c10_93], %87 {strides = array<i32>} : memref<24x102xf32, #tpu.memory_space<vmem>>, vector<4x80xf32>,
      %89 = vector.extract_strided_slice %11 {offsets = [0, 16], sizes = [4, 8], strides = [1, 1]} : vector<4x24xf32> to vector<4x8xf32>
      %c0_94 = arith.constant 0 : index
      %c0_95 = arith.constant 0 : index
      %90 = vector.load %arg11[%c0_94, %c0_95] : memref<8x80xf32, #tpu.memory_space<vmem>>, vector<8x80xf32>
      %cst_96 = arith.constant dense<0.000000e+00> : vector<4x80xf32>
      %91 = tpu.matmul %89, %90, %cst_96 {dimension_numbers = #tpu.dot_dimension_numbers<[1], [0], [0], [1], [0, 0, 1, 1], [], []>} : vector<4x8xf32>, vector<8x80xf32>, vector<4x80xf32> -> vector<4x80xf32>
      %c16 = arith.constant 16 : index
      %c10_97 = arith.constant 10 : index
      %92 = vector.load %arg13[%c16, %c10_97] : memref<24x102xf32, #tpu.memory_space<vmem>>, vector<4x80xf32>
      tpu.vector_store %arg13[%c16, %c10_97], %91 {strides = array<i32>} : memref<24x102xf32, #tpu.memory_space<vmem>>, vector<4x80xf32>,
    } else {
    }
    %c2_i32 = arith.constant 2 : i32
    %28 = arith.cmpi eq, %arg0, %c2_i32 : i32
    %29 = arith.extui %28 : i1 to i32
    %c0_i32_25 = arith.constant 0 : i32
    %30 = arith.cmpi ne, %29, %c0_i32_25 : i32
    scf.if %30 {
      %82 = vector.extract_strided_slice %11 {offsets = [0, 0], sizes = [4, 8], strides = [1, 1]} : vector<4x24xf32> to vector<4x8xf32>
      %c0_84 = arith.constant 0 : index
      %c0_85 = arith.constant 0 : index
      %83 = vector.load %arg10[%c0_84, %c0_85] : memref<8x80xf32, #tpu.memory_space<vmem>>, vector<8x80xf32>
      %cst_86 = arith.constant dense<0.000000e+00> : vector<4x80xf32>
      %84 = tpu.matmul %82, %83, %cst_86 {dimension_numbers = #tpu.dot_dimension_numbers<[1], [0], [0], [1], [0, 0, 1, 1], [], []>} : vector<4x8xf32>, vector<8x80xf32>, vector<4x80xf32> -> vector<4x80xf32>
      %c0_87 = arith.constant 0 : index
      %c10_88 = arith.constant 10 : index
      %85 = vector.load %arg13[%c0_87, %c10_88] : memref<24x102xf32, #tpu.memory_space<vmem>>, vector<4x80xf32>
      tpu.vector_store %arg13[%c0_87, %c10_88], %84 {strides = array<i32>} : memref<24x102xf32, #tpu.memory_space<vmem>>, vector<4x80xf32>,
      %86 = vector.extract_strided_slice %11 {offsets = [0, 8], sizes = [4, 8], strides = [1, 1]} : vector<4x24xf32> to vector<4x8xf32>
      %c0_89 = arith.constant 0 : index
      %c0_90 = arith.constant 0 : index
      %87 = vector.load %arg11[%c0_89, %c0_90] : memref<8x80xf32, #tpu.memory_space<vmem>>, vector<8x80xf32>
      %cst_91 = arith.constant dense<0.000000e+00> : vector<4x80xf32>
      %88 = tpu.matmul %86, %87, %cst_91 {dimension_numbers = #tpu.dot_dimension_numbers<[1], [0], [0], [1], [0, 0, 1, 1], [], []>} : vector<4x8xf32>, vector<8x80xf32>, vector<4x80xf32> -> vector<4x80xf32>
      %c8_92 = arith.constant 8 : index
      %c10_93 = arith.constant 10 : index
      %89 = vector.load %arg13[%c8_92, %c10_93] : memref<24x102xf32, #tpu.memory_space<vmem>>, vector<4x80xf32>
      tpu.vector_store %arg13[%c8_92, %c10_93], %88 {strides = array<i32>} : memref<24x102xf32, #tpu.memory_space<vmem>>, vector<4x80xf32>,
      %c0_94 = arith.constant 0 : index
      %c0_95 = arith.constant 0 : index
      %c0_96 = arith.constant 0 : index
      %90 = vector.load %arg3[%c0_94, %c0_95, %c0_96] : memref<1x4x80xf32, #tpu.memory_space<vmem>>, vector<1x4x80xf32>
      %91 = vector.shape_cast %90 : vector<1x4x80xf32> to vector<4x80xf32>
      %c16 = arith.constant 16 : index
      %c10_97 = arith.constant 10 : index
      %92 = vector.load %arg13[%c16, %c10_97] : memref<24x102xf32, #tpu.memory_space<vmem>>, vector<4x80xf32>
      tpu.vector_store %arg13[%c16, %c10_97], %91 {strides = array<i32>} : memref<24x102xf32, #tpu.memory_space<vmem>>, vector<4x80xf32>,
    } else {
    }
    %c0_26 = arith.constant 0 : index
    %c0_27 = arith.constant 0 : index
    %c0_28 = arith.constant 0 : index
    %c0_29 = arith.constant 0 : index
    %31 = vector.load %arg8[%c0_26, %c0_27, %c0_28, %c0_29] : memref<1x9x4x24xf32, #tpu.memory_space<vmem>>, vector<1x1x4x24xf32>
    %32 = vector.shape_cast %31 : vector<1x1x4x24xf32> to vector<4x24xf32>
    %c0_30 = arith.constant 0 : index
    %c0_31 = arith.constant 0 : index
    %33 = vector.load %arg13[%c0_30, %c0_31] : memref<24x102xf32, #tpu.memory_space<vmem>>, vector<24x80xf32>
    %cst_32 = arith.constant dense<0.000000e+00> : vector<4x80xf32>
    %34 = tpu.matmul %32, %33, %cst_32 {dimension_numbers = #tpu.dot_dimension_numbers<[1], [0], [0], [1], [0, 0, 1, 1], [], []>} : vector<4x24xf32>, vector<24x80xf32>, vector<4x80xf32> -> vector<4x80xf32>
    %c0_33 = arith.constant 0 : index
    %c1 = arith.constant 1 : index
    %c0_34 = arith.constant 0 : index
    %c0_35 = arith.constant 0 : index
    %35 = vector.load %arg8[%c0_33, %c1, %c0_34, %c0_35] : memref<1x9x4x24xf32, #tpu.memory_space<vmem>>, vector<1x1x4x24xf32>
    %36 = vector.shape_cast %35 : vector<1x1x4x24xf32> to vector<4x24xf32>
    %c0_36 = arith.constant 0 : index
    %c1_37 = arith.constant 1 : index
    %37 = vector.load %arg13[%c0_36, %c1_37] : memref<24x102xf32, #tpu.memory_space<vmem>>, vector<24x80xf32>
    %cst_38 = arith.constant dense<0.000000e+00> : vector<4x80xf32>
    %38 = tpu.matmul %36, %37, %cst_38 {dimension_numbers = #tpu.dot_dimension_numbers<[1], [0], [0], [1], [0, 0, 1, 1], [], []>} : vector<4x24xf32>, vector<24x80xf32>, vector<4x80xf32> -> vector<4x80xf32>
    %39 = arith.addf %34, %38 : vector<4x80xf32>
    %c0_39 = arith.constant 0 : index
    %c2 = arith.constant 2 : index
    %c0_40 = arith.constant 0 : index
    %c0_41 = arith.constant 0 : index
    %40 = vector.load %arg8[%c0_39, %c2, %c0_40, %c0_41] : memref<1x9x4x24xf32, #tpu.memory_space<vmem>>, vector<1x1x4x24xf32>
    %41 = vector.shape_cast %40 : vector<1x1x4x24xf32> to vector<4x24xf32>
    %c0_42 = arith.constant 0 : index
    %c2_43 = arith.constant 2 : index
    %42 = vector.load %arg13[%c0_42, %c2_43] : memref<24x102xf32, #tpu.memory_space<vmem>>, vector<24x80xf32>
    %cst_44 = arith.constant dense<0.000000e+00> : vector<4x80xf32>
    %43 = tpu.matmul %41, %42, %cst_44 {dimension_numbers = #tpu.dot_dimension_numbers<[1], [0], [0], [1], [0, 0, 1, 1], [], []>} : vector<4x24xf32>, vector<24x80xf32>, vector<4x80xf32> -> vector<4x80xf32>
    %44 = arith.addf %39, %43 : vector<4x80xf32>
    %c0_45 = arith.constant 0 : index
    %c3 = arith.constant 3 : index
    %c0_46 = arith.constant 0 : index
    %c0_47 = arith.constant 0 : index
    %45 = vector.load %arg8[%c0_45, %c3, %c0_46, %c0_47] : memref<1x9x4x24xf32, #tpu.memory_space<vmem>>, vector<1x1x4x24xf32>
    %46 = vector.shape_cast %45 : vector<1x1x4x24xf32> to vector<4x24xf32>
    %c0_48 = arith.constant 0 : index
    %c10 = arith.constant 10 : index
    %47 = vector.load %arg13[%c0_48, %c10] : memref<24x102xf32, #tpu.memory_space<vmem>>, vector<24x80xf32>
    %cst_49 = arith.constant dense<0.000000e+00> : vector<4x80xf32>
    %48 = tpu.matmul %46, %47, %cst_49 {dimension_numbers = #tpu.dot_dimension_numbers<[1], [0], [0], [1], [0, 0, 1, 1], [], []>} : vector<4x24xf32>, vector<24x80xf32>, vector<4x80xf32> -> vector<4x80xf32>
    %49 = arith.addf %44, %48 : vector<4x80xf32>
    %c0_50 = arith.constant 0 : index
    %c4_51 = arith.constant 4 : index
    %c0_52 = arith.constant 0 : index
    %c0_53 = arith.constant 0 : index
    %50 = vector.load %arg8[%c0_50, %c4_51, %c0_52, %c0_53] : memref<1x9x4x24xf32, #tpu.memory_space<vmem>>, vector<1x1x4x24xf32>
    %51 = vector.shape_cast %50 : vector<1x1x4x24xf32> to vector<4x24xf32>
    %c0_54 = arith.constant 0 : index
    %c11 = arith.constant 11 : index
    %52 = vector.load %arg13[%c0_54, %c11] : memref<24x102xf32, #tpu.memory_space<vmem>>, vector<24x80xf32>
    %cst_55 = arith.constant dense<0.000000e+00> : vector<4x80xf32>
    %53 = tpu.matmul %51, %52, %cst_55 {dimension_numbers = #tpu.dot_dimension_numbers<[1], [0], [0], [1], [0, 0, 1, 1], [], []>} : vector<4x24xf32>, vector<24x80xf32>, vector<4x80xf32> -> vector<4x80xf32>
    %54 = arith.addf %49, %53 : vector<4x80xf32>
    %c0_56 = arith.constant 0 : index
    %c5 = arith.constant 5 : index
    %c0_57 = arith.constant 0 : index
    %c0_58 = arith.constant 0 : index
    %55 = vector.load %arg8[%c0_56, %c5, %c0_57, %c0_58] : memref<1x9x4x24xf32, #tpu.memory_space<vmem>>, vector<1x1x4x24xf32>
    %56 = vector.shape_cast %55 : vector<1x1x4x24xf32> to vector<4x24xf32>
    %c0_59 = arith.constant 0 : index
    %c12_60 = arith.constant 12 : index
    %57 = vector.load %arg13[%c0_59, %c12_60] : memref<24x102xf32, #tpu.memory_space<vmem>>, vector<24x80xf32>
    %cst_61 = arith.constant dense<0.000000e+00> : vector<4x80xf32>
    %58 = tpu.matmul %56, %57, %cst_61 {dimension_numbers = #tpu.dot_dimension_numbers<[1], [0], [0], [1], [0, 0, 1, 1], [], []>} : vector<4x24xf32>, vector<24x80xf32>, vector<4x80xf32> -> vector<4x80xf32>
    %59 = arith.addf %54, %58 : vector<4x80xf32>
    %c0_62 = arith.constant 0 : index
    %c6 = arith.constant 6 : index
    %c0_63 = arith.constant 0 : index
    %c0_64 = arith.constant 0 : index
    %60 = vector.load %arg8[%c0_62, %c6, %c0_63, %c0_64] : memref<1x9x4x24xf32, #tpu.memory_space<vmem>>, vector<1x1x4x24xf32>
    %61 = vector.shape_cast %60 : vector<1x1x4x24xf32> to vector<4x24xf32>
    %c0_65 = arith.constant 0 : index
    %c20_66 = arith.constant 20 : index
    %62 = vector.load %arg13[%c0_65, %c20_66] : memref<24x102xf32, #tpu.memory_space<vmem>>, vector<24x80xf32>
    %cst_67 = arith.constant dense<0.000000e+00> : vector<4x80xf32>
    %63 = tpu.matmul %61, %62, %cst_67 {dimension_numbers = #tpu.dot_dimension_numbers<[1], [0], [0], [1], [0, 0, 1, 1], [], []>} : vector<4x24xf32>, vector<24x80xf32>, vector<4x80xf32> -> vector<4x80xf32>
    %64 = arith.addf %59, %63 : vector<4x80xf32>
    %c0_68 = arith.constant 0 : index
    %c7 = arith.constant 7 : index
    %c0_69 = arith.constant 0 : index
    %c0_70 = arith.constant 0 : index
    %65 = vector.load %arg8[%c0_68, %c7, %c0_69, %c0_70] : memref<1x9x4x24xf32, #tpu.memory_space<vmem>>, vector<1x1x4x24xf32>
    %66 = vector.shape_cast %65 : vector<1x1x4x24xf32> to vector<4x24xf32>
    %c0_71 = arith.constant 0 : index
    %c21 = arith.constant 21 : index
    %67 = vector.load %arg13[%c0_71, %c21] : memref<24x102xf32, #tpu.memory_space<vmem>>, vector<24x80xf32>
    %cst_72 = arith.constant dense<0.000000e+00> : vector<4x80xf32>
    %68 = tpu.matmul %66, %67, %cst_72 {dimension_numbers = #tpu.dot_dimension_numbers<[1], [0], [0], [1], [0, 0, 1, 1], [], []>} : vector<4x24xf32>, vector<24x80xf32>, vector<4x80xf32> -> vector<4x80xf32>
    %69 = arith.addf %64, %68 : vector<4x80xf32>
    %c0_73 = arith.constant 0 : index
    %c8 = arith.constant 8 : index
    %c0_74 = arith.constant 0 : index
    %c0_75 = arith.constant 0 : index
    %70 = vector.load %arg8[%c0_73, %c8, %c0_74, %c0_75] : memref<1x9x4x24xf32, #tpu.memory_space<vmem>>, vector<1x1x4x24xf32>
    %71 = vector.shape_cast %70 : vector<1x1x4x24xf32> to vector<4x24xf32>
    %c0_76 = arith.constant 0 : index
    %c22 = arith.constant 22 : index
    %72 = vector.load %arg13[%c0_76, %c22] : memref<24x102xf32, #tpu.memory_space<vmem>>, vector<24x80xf32>
    %cst_77 = arith.constant dense<0.000000e+00> : vector<4x80xf32>
    %73 = tpu.matmul %71, %72, %cst_77 {dimension_numbers = #tpu.dot_dimension_numbers<[1], [0], [0], [1], [0, 0, 1, 1], [], []>} : vector<4x24xf32>, vector<24x80xf32>, vector<4x80xf32> -> vector<4x80xf32>
    %74 = arith.addf %69, %73 : vector<4x80xf32>
    %c0_78 = arith.constant 0 : index
    %c0_79 = arith.constant 0 : index
    %c0_80 = arith.constant 0 : index
    %75 = vector.load %arg9[%c0_78, %c0_79, %c0_80] : memref<1x4x1xf32, #tpu.memory_space<vmem>>, vector<1x4x1xf32>
    %76 = vector.shape_cast %75 : vector<1x4x1xf32> to vector<4x1xf32>
    %77 = vector.broadcast %76 : vector<4x1xf32> to vector<4x80xf32>
    %78 = arith.addf %74, %77 : vector<4x80xf32>
    %c0_81 = arith.constant 0 : index
    %c0_82 = arith.constant 0 : index
    %c0_83 = arith.constant 0 : index
    %79 = vector.load %arg12[%c0_81, %c0_82, %c0_83] : memref<1x4x80xf32, #tpu.memory_space<vmem>>, vector<1x4x80xf32>
    %80 = vector.shape_cast %79 : vector<1x4x80xf32> to vector<4x80xf32>
    %81 = vector.shape_cast %78 : vector<4x80xf32> to vector<1x4x80xf32>
    tpu.vector_store %arg12[%c0_81, %c0_82, %c0_83], %81 {strides = array<i32>} : memref<1x4x80xf32, #tpu.memory_space<vmem>>, vector<1x4x80xf32>,
    return
  }
  func.func @transform_0(%arg0: i32) -> (i32, i32) {
    %c0_i32 = arith.constant 0 : i32
    %c0_i32_0 = arith.constant 0 : i32
    %c0_i32_1 = arith.constant 0 : i32
    return %c0_i32, %c0_i32_0 : i32, i32
  }
  func.func @transform_1(%arg0: i32) -> (i32, i32) {
    %c0_i32 = arith.constant 0 : i32
    %c0_i32_0 = arith.constant 0 : i32
    %c0_i32_1 = arith.constant 0 : i32
    return %c0_i32, %c0_i32_0 : i32, i32
  }
  func.func @transform_2(%arg0: i32) -> (i32, i32, i32) {
    %c0_i32 = arith.constant 0 : i32
    %c0_i32_0 = arith.constant 0 : i32
    %c0_i32_1 = arith.constant 0 : i32
    return %arg0, %c0_i32, %c0_i32_0 : i32, i32, i32
  }
  func.func @transform_3(%arg0: i32) -> (i32, i32) {
    %c0_i32 = arith.constant 0 : i32
    %c0_i32_0 = arith.constant 0 : i32
    %c0_i32_1 = arith.constant 0 : i32
    return %c0_i32, %c0_i32_0 : i32, i32
  }
  func.func @transform_4(%arg0: i32) -> (i32, i32) {
    %c0_i32 = arith.constant 0 : i32
    %c0_i32_0 = arith.constant 0 : i32
    %c0_i32_1 = arith.constant 0 : i32
    return %c0_i32, %c0_i32_0 : i32, i32
  }
  func.func @transform_5(%arg0: i32) -> (i32, i32) {
    %c0_i32 = arith.constant 0 : i32
    %c0_i32_0 = arith.constant 0 : i32
    %c0_i32_1 = arith.constant 0 : i32
    return %c0_i32, %c0_i32_0 : i32, i32
  }
  func.func @transform_6(%arg0: i32) -> (i32, i32) {
    %c0_i32 = arith.constant 0 : i32
    %c0_i32_0 = arith.constant 0 : i32
    %c0_i32_1 = arith.constant 0 : i32
    return %c0_i32, %c0_i32_0 : i32, i32
  }
  func.func @transform_7(%arg0: i32) -> (i32, i32, i32, i32) {
    %c0_i32 = arith.constant 0 : i32
    %c0_i32_0 = arith.constant 0 : i32
    %c0_i32_1 = arith.constant 0 : i32
    %c0_i32_2 = arith.constant 0 : i32
    return %arg0, %c0_i32, %c0_i32_0, %c0_i32_1 : i32, i32, i32, i32
  }
  func.func @transform_8(%arg0: i32) -> (i32, i32, i32) {
    %c0_i32 = arith.constant 0 : i32
    %c0_i32_0 = arith.constant 0 : i32
    %c0_i32_1 = arith.constant 0 : i32
    return %arg0, %c0_i32, %c0_i32_0 : i32, i32, i32
  }
  func.func @transform_9(%arg0: i32) -> (i32, i32) {
    %c0_i32 = arith.constant 0 : i32
    %c0_i32_0 = arith.constant 0 : i32
    %c0_i32_1 = arith.constant 0 : i32
    return %c0_i32, %c0_i32_0 : i32, i32
  }
  func.func @transform_10(%arg0: i32) -> (i32, i32) {
    %c0_i32 = arith.constant 0 : i32
    %c0_i32_0 = arith.constant 0 : i32
    %c0_i32_1 = arith.constant 0 : i32
    return %c0_i32, %c0_i32_0 : i32, i32
  }
  func.func @transform_11(%arg0: i32) -> (i32, i32, i32) {
    %c0_i32 = arith.constant 0 : i32
    %c0_i32_0 = arith.constant 0 : i32
    %c0_i32_1 = arith.constant 0 : i32
    return %arg0, %c0_i32, %c0_i32_0 : i32, i32, i32
  }
}

</mosaic_0001>

<bundles_post_ra>
// kernel: tpu_custom_call.1
= control target key start
LH: loop header
LB: loop body
LE: loop exit
PB: predicated region body
PF: predicated region fallthrough
CT: control target
= control target key end

     0   :  { %16 = vsyncpa [#allocation4], 0  ;;  %s2695_s0 = inlined_call_operand.vmem [shape: f32[32,24], index: 0, kind: input, shape index: {}]   ;;  %s2696_s1 = inlined_call_operand.vmem [shape: f32[32,24], index: 1, kind: input, shape index: {}]   ;;  %s2697_s2 = inlined_call_operand.vmem [shape: f32[3,4,80], index: 2, kind: input, shape index: {}]   ;;  %s2698_s3 = inlined_call_operand.vmem [shape: f32[4,32], index: 3, kind: input, shape index: {}]   ;;  %s2699_s4 = inlined_call_operand.vmem [shape: f32[4,1], index: 4, kind: input, shape index: {}]   ;;  %s2700_s5 = inlined_call_operand.vmem [shape: f32[4,32], index: 5, kind: input, shape index: {}]   ;;  %s2701_s6 = inlined_call_operand.vmem [shape: f32[4,1], index: 6, kind: input, shape index: {}]   ;;  %s2702_s7 = inlined_call_operand.vmem [shape: f32[3,9,4,24], index: 7, kind: input, shape index: {}]   ;;  %s2703_s8 = inlined_call_operand.vmem [shape: f32[3,4,1], index: 8, kind: input, shape index: {}]   ;;  %s2704_s9 = inlined_call_operand.vmem [shape: f32[8,80], index: 9, kind: input, shape index: {}]   ;;  %s2705_s10 = inlined_call_operand.vmem [shape: f32[8,80], index: 10, kind: input, shape index: {}]   ;;  %s2706_s11 = inlined_call_operand.hbm [shape: f32[3,4,80], index: 11, kind: output, shape index: {}]  }
   0x1   :  { %18 = vsyncpa [#allocation4 + $0x1], 0  ;;  %s2426_s17 = smov 0   ;;  %s2428_s18 = smov 0  }
   0x2   :  { %s2430_s19 = smov 0   ;;  %s2432_s20 = smov 0  }
   0x3 LB: > { %2713 = sst [smem:[#allocation6_spill]] %s2327_s17  ;;  %s2447_s21 = sadd.s32 4294967295, %s2339_s20   ;;  %s2339_s20 = sphi %s2432_s20, %s2723_s20   ;;  %s2335_s19 = sphi %s2430_s19, %s2725_s19   ;;  %s2331_s18 = sphi %s2428_s18, %s2727_s18   ;;  %s2327_s17 = sphi %s2426_s17, %s2726_s17  }
   0x4   : > { %2714 = sst [smem:[#allocation7_spill]] %s2335_s19  ;;  %s1982_s22 = sadd.s32 4294967294, %s2339_s20  }
   0x5   : > { %s2451_s23 = sadd.s32 1, %s2339_s20   ;;  %s277_s24 = sadd.s32 1, %s2335_s19 }
   0x6   : > { %2715 = sst [smem:[#allocation8_spill]] %s2451_s23  ;;  %s274_s25 = ssub.s32 %s2339_s20, %s2451_s23 }
   0x7   : > { %p287_p0 = scmp.ne.s32.totalorder %s2335_s19, %s2331_s18  ;;  %p275_p1 = scmp.eq.s32.totalorder %s274_s25, 0 }
   0x8   : > { %p288_p2 = scmp.eq.s32.totalorder %s2447_s21, 2  ;;  %p293_p3 = scmp.ne.s32.totalorder %s2331_s18, %s2327_s17 }
   0x9   : > { %p294_p4 = scmp.eq.s32.totalorder %s1982_s22, 2  ;;  %p1985_p7 = scmp.ge.s32.totalorder %s2339_s20, 1 }
   0xa   : > { %s2462_s26 = scalar_select %p275_p1, %s2335_s19, %s277_s24  }
   0xb   : > { %p2464_p5 = por %p288_p2, %p287_p0  ;;  %p2468_p6 = por %p294_p4, %p293_p3 }
   0xc   : > { %2716 = sst [smem:[#allocation9_spill]] %s2462_s26  ;;  %p358_p8 = scmp.lt.s32.totalorder %s2339_s20, 4 }
   0xd   : > { %s2718_s28 = scalar_select %p2468_p6, 1, 0 }
   0xe   : > { %p359_p9 = pnand %p1985_p7, %p358_p8 }
   0xf   : > { %2719 = sst [smem:[#allocation10_spill]] %s2718_s28  ;;  %s2707_s29 = sand.u32 (!%p359_p9), 1, %s2331_s18  }
  0x10   : > { %362 = sbr.rel (%p359_p9) target bundleno = 1899 (0x76b), region = 64  ;;  %p406_p10 = scmp.lt.s32.totalorder (!%p359_p9), %s2447_s21, 2 }
  0x11   : > { %s2478_s30 = sshll.u32 (!%p359_p9), %s2707_s29, 2  ;;  %p1992_p11 = scmp.ne.s32.totalorder (!%p359_p9), %s2447_s21, 0 }
  0x12   : > { %s405_s14 = scalar_lea.vmem (!%p359_p9), [#allocation3], %s2478_s30 }
  0x15   : > { %vm588_vm0 = vcmask 80896   ;;  %vm592_vm1 = vcmask 835280   ;;  %vm596_vm2 = vcmask 830464   ;;  %v2341_v0 = vmov 0.0   ;;  %v423_v1 = vld [vmem:[%s2695_s0 + $0x18] sm:$0xff]  ;;  %v422_v3 = vld [vmem:[%s2695_s0 + $0x10] sm:$0xff] }
  0x16   : > { %2080 = vmatprep.subr.mxu0 %v2341_v0  ;;  %589 = vst.msk [vmem:[#allocation2] sm:$0xff] %vm588_vm0, %v2341_v0  ;;  %590 = vst.msk [vmem:[#allocation2 + $0x8] sm:$0xff] %vm588_vm0, %v2341_v0  ;;  %2091 = vmatprep.subr.mxu1 %v2341_v0  ;;  %v508_v2 = vld [vmem:[%s2696_s1 + $0x18] sm:$0xff]  ;;  %v507_v4 = vld [vmem:[%s2696_s1 + $0x10] sm:$0xff]  ;;  %s407_s12 = scalar_select %p406_p10, %s2447_s21, 2  ;;  %vm430_vm3 = vcmask 261120  }
  0x17   : > { %591 = vst.msk [vmem:[#allocation2 + $0x10] sm:$0xff] %vm588_vm0, %v2341_v0  ;;  %2081 = vmatpush3.msra.mxu0 %v423_v1  ;;  %2092 = vmatpush3.msra.mxu1 %v508_v2  ;;  %v421_v5 = vld [vmem:[%s2695_s0 + $0x8] sm:$0xff]  ;;  %v420_v7 = vld [vmem:[%s2695_s0] sm:$0xff]  ;;  %vm2342_vm4 = vmmov 0   ;;  %v2343_v12 = vmov 0   ;;  %s2344_s19 = smov (!%p1992_p11), 120  }
  0x18   : > { %593 = vst.msk [vmem:[#allocation2] sm:$0xff] %vm592_vm1, %v2341_v0  ;;  %594 = vst.msk [vmem:[#allocation2 + $0x8] sm:$0xff] %vm592_vm1, %v2341_v0  ;;  %2082 = vmatprep.subr.mxu0 %v2341_v0  ;;  %2093 = vmatprep.subr.mxu1 %v2341_v0  ;;  %v506_v6 = vld [vmem:[%s2696_s1 + $0x8] sm:$0xff]  ;;  %s1987_s22 = sshll.u32 %s407_s12, 2  ;;  %s2213_s24 = smul.u32 36, %s407_s12  ;;  %v505_v8 = vld [vmem:[%s2696_s1] sm:$0xff] }
  0x19   : > { %595 = vst.msk [vmem:[#allocation2 + $0x10] sm:$0xff] %vm592_vm1, %v2341_v0  ;;  %2083 = vmatpush3.msra.mxu0 %v422_v3  ;;  %2094 = vmatpush3.msra.mxu1 %v507_v4  ;;  %s2525_s13 = scalar_lea.vmem %s2697_s2, %s1987_s22  ;;  %s2530_s16 = scalar_lea.vmem %s2703_s8, %s1987_s22  ;;  %v419_v9 = vld [vmem:[%s2698_s3] sm:$0xf] }
  0x1a   : > { %597 = vst.msk [vmem:[#allocation2 + $0x4] sm:$0xf] %vm596_vm2, %v2341_v0  ;;  %598 = vst.msk [vmem:[#allocation2 + $0xc] sm:$0xf] %vm596_vm2, %v2341_v0  ;;  %2084 = vmatprep.subr.mxu0 %v2341_v0  ;;  %2095 = vmatprep.subr.mxu1 %v2341_v0  ;;  %s2538_s29 = scalar_lea.vmem %s2702_s7, %s2213_s24  ;;  %v504_v10 = vld [vmem:[%s2700_s5] sm:$0xf] }
  0x1b   : > { %599 = vst.msk [vmem:[#allocation2 + $0x14] sm:$0xf] %vm596_vm2, %v2341_v0  ;;  %2085 = vmatpush3.msra.mxu0 %v421_v5  ;;  %2096 = vmatpush3.msra.mxu1 %v506_v6  ;;  %v424_v11 = vld [vmem:[%s2699_s4] sm:$0xf]  ;;  %s2347_s25 = smov (!%p1992_p11), 10   ;;  %s2348_s17 = smov (!%p1992_p11), 112  }
  0x1c   : > { %2086 = vmatprep.subr.mxu0 %v2341_v0  ;;  %2097 = vmatprep.subr.mxu1 %v2341_v0  ;;  %v509_v13 = vld [vmem:[%s2701_s6] sm:$0xf] }
  0x1d   : > { %2087 = vmatpush3.msra.mxu0 %v420_v7  ;;  %2088 = vmatprep.mubr.msk.f32.mxu0 %vm2342_vm4, %v2341_v0 }
  0x1e   : > { %2098 = vmatpush3.msra.mxu1 %v505_v8  ;;  %2099 = vmatprep.mubr.msk.f32.mxu1 %vm2342_vm4, %v2341_v0 }
  0x1f   : > { %2089 = vmatmul.mubr.msk.f32.vlgmr.msra.gmra.mxu0 %vm430_vm3, %v419_v9  ;;  %2100 = vmatmul.mubr.msk.f32.vlgmr.msra.gmra.mxu1 %vm430_vm3, %v504_v10 }
  0x20   : > { %2277 = vset.pattern.permute.xlu0 %v2343_v12 }
  0x21   : > { %427 = vperm.xlu0 %2277, %v424_v11  }
  0x25   : > { %512 = vperm.xlu0 %2277, %v509_v13  }
  0x9c   : > { %v428_v14 = vpop.permute.xlu0 %427 }
  0xa0   : > { %v513_v15 = vpop.permute.xlu0 %512 }
  0xdd   : > { %603 = sbr.rel (%p1992_p11) target bundleno = 654 (0x28e), region = 68 }
  0xdf   : > { %v500_v16 = vpop.f32.mrf.mxu0  ;;  %v584_v17 = vpop.f32.mrf.mxu1 }
  0xe0   : > { %v501_v18 = vadd.f32 %v500_v16, %v428_v14  ;;  %v2559_v19 = vadd.f32 %v584_v17, %v513_v15 }
  0xe1   : > { %v2090_v20 = vpop.f32.mrf.mxu0  ;;  %v2101_v21 = vpop.f32.mrf.mxu1 }
  0xe2   : > { %v611_v22 = vld [vmem:[%s2704_s9] sm:$0xff]  ;;  %613 = vrot.lane.b32.xlu0 %v501_v18, %s2344_s19  ;;  %v2345_v23 = vmov 0.0   ;;  %vm2346_vm5 = vmmov 0   ;;  %vm615_vm6 = vcmask 64512   ;;  %vm609_vm7 = vcmask 732240  }
  0xe3   : > { %2102 = vmatprep.subr.mxu0 %v2345_v23  ;;  %v693_v24 = vld [vmem:[%s2705_s10] sm:$0xff]  ;;  %2104 = vmatprep.mubr.msk.f32.mxu0 %vm2346_vm5, %v2345_v23 }
  0xe4   : > { %v604_v25 = vld [vmem:[%s2525_s13] sm:$0xf]  ;;  %2103 = vmatpush3.msra.mxu0 %v611_v22  ;;  %2107 = vmatprep.subr.mxu1 %v2345_v23 }
  0xe5   : > { %2109 = vmatprep.mubr.msk.f32.mxu1 %vm2346_vm5, %v2345_v23  ;;  %2108 = vmatpush3.msra.mxu1 %v693_v24 }
  0xe6   : > { %606 = vrot.lane.b32.xlu1 %v604_v25, %s2347_s25  ;;  %694 = vrot.lane.b32.xlu0 %v501_v18, %s2348_s17 }
 0x154   : > { %v614_v26 = vpop.permute.xlu0 %613 }
 0x155   : > { %2105 = vmatmul.mubr.msk.f32.vlgmr.msra.gmra.mxu0 %vm615_vm6, %v614_v26 }
 0x158   : > { %v695_v27 = vpop.permute.xlu0 %694  ;;  %v607_v28 = vpop.permute.xlu1 %606 }
 0x159   : > { %2110 = vmatmul.mubr.msk.f32.vlgmr.msra.gmra.mxu1 %vm615_vm6, %v695_v27  ;;  %610 = vst.msk [vmem:[#allocation2] sm:$0xf] %vm609_vm7, %v607_v28 }
 0x215   : > { %v684_v29 = vpop.f32.mrf.mxu0 }
 0x216   : > { %689 = vrot.lane.b32.xlu1 %v684_v29, %s2347_s25 }
 0x217   : > { %v2106_v30 = vpop.f32.mrf.mxu0 }
 0x219   : > { %v764_v31 = vpop.f32.mrf.mxu1 }
 0x21a   : > { %769 = vrot.lane.b32.xlu0 %v764_v31, %s2347_s25 }
 0x21b   : > { %v2111_v32 = vpop.f32.mrf.mxu1 }
 0x288   : > { %v690_v33 = vpop.permute.xlu1 %689 }
 0x289   : > { %692 = vst.msk [vmem:[#allocation2 + $0x8] sm:$0xf] %vm609_vm7, %v690_v33 }
 0x28c   : > { %v770_v34 = vpop.permute.xlu0 %769 }
 0x28d   : > { %772 = vst.msk [vmem:[#allocation2 + $0x10] sm:$0xf] %vm609_vm7, %v770_v34 }
 0x28e PF: > { %p1995_p12 = scmp.ne.s32.totalorder %s2447_s21, 1 }
 0x28f   : > { %s2349_s24 = smov (!%p1995_p12), 112   ;;  %s2352_s19 = smov (!%p1995_p12), 10  }
 0x290   : > { %776 = sbr.rel (%p1995_p12) target bundleno = 1085 (0x43d), region = 72 }
 0x295   : > { %v777_v35 = vld [vmem:[%s2704_s9] sm:$0xff]  ;;  %vm778_vm8 = vcmask 64512   ;;  %866 = vrot.lane.b32.xlu0 %v2559_v19, %s2349_s24  ;;  %v2350_v36 = vmov 0.0   ;;  %vm2351_vm9 = vmmov 0   ;;  %vm856_vm10 = vcmask 732240  }
 0x296   : > { %2112 = vmatprep.subr.mxu0 %v2350_v36  ;;  %v864_v37 = vld [vmem:[%s2705_s10] sm:$0xff]  ;;  %2114 = vmatprep.mubr.msk.f32.mxu0 %vm2351_vm9, %v2350_v36 }
 0x297   : > { %2113 = vmatpush3.msra.mxu0 %v777_v35  ;;  %v858_v38 = vld [vmem:[%s2525_s13] sm:$0xf]  ;;  %2117 = vmatprep.subr.mxu1 %v2350_v36 }
 0x298   : > { %2115 = vmatmul.mubr.msk.f32.vlgmr.msra.gmra.mxu0 %vm778_vm8, %v501_v18  ;;  %2118 = vmatpush3.msra.mxu1 %v864_v37 }
 0x299   : > { %2119 = vmatprep.mubr.msk.f32.mxu1 %vm2351_vm9, %v2350_v36  ;;  %860 = vrot.lane.b32.xlu1 %v858_v38, %s2352_s19 }
 0x307   : > { %v867_v39 = vpop.permute.xlu0 %866 }
 0x308   : > { %2120 = vmatmul.mubr.msk.f32.vlgmr.msra.gmra.mxu1 %vm778_vm8, %v867_v39 }
 0x30b   : > { %v861_v40 = vpop.permute.xlu1 %860 }
 0x30c   : > { %863 = vst.msk [vmem:[#allocation2 + $0x8] sm:$0xf] %vm856_vm10, %v861_v40 }
 0x358   : > { %v848_v41 = vpop.f32.mrf.mxu0 }
 0x359   : > { %853 = vrot.lane.b32.xlu0 %v848_v41, %s2352_s19 }
 0x35a   : > { %v2116_v42 = vpop.f32.mrf.mxu0 }
 0x3c8   : > { %v936_v43 = vpop.f32.mrf.mxu1 }
 0x3c9   : > { %941 = vrot.lane.b32.xlu1 %v936_v43, %s2352_s19 }
 0x3ca   : > { %v2121_v44 = vpop.f32.mrf.mxu1 }
 0x3cb   : > { %v854_v45 = vpop.permute.xlu0 %853 }
 0x3cc   : > { %857 = vst.msk [vmem:[#allocation2] sm:$0xf] %vm856_vm10, %v854_v45 }
 0x43b   : > { %v942_v46 = vpop.permute.xlu1 %941 }
 0x43c   : > { %944 = vst.msk [vmem:[#allocation2 + $0x10] sm:$0xf] %vm856_vm10, %v942_v46 }
 0x43d PF: > { %p1998_p13 = scmp.ne.s32.totalorder %s2447_s21, 2 }
 0x43e   : > { %s2353_s25 = smov (!%p1998_p13), 120   ;;  %s2356_s28 = smov (!%p1998_p13), 10  }
 0x43f   : > { %948 = sbr.rel (%p1998_p13) target bundleno = 1520 (0x5f0), region = 76 }
 0x444   : > { %v1030_v47 = vld [vmem:[%s2705_s10] sm:$0xff]  ;;  %1031 = vrot.lane.b32.xlu0 %v2559_v19, %s2353_s25  ;;  %v2354_v48 = vmov 0.0   ;;  %vm2355_vm11 = vmmov 0   ;;  %vm950_vm12 = vcmask 64512   ;;  %vm1028_vm13 = vcmask 732240  }
 0x445   : > { %2127 = vmatprep.subr.mxu1 %v2354_v48  ;;  %v949_v49 = vld [vmem:[%s2704_s9] sm:$0xff]  ;;  %2129 = vmatprep.mubr.msk.f32.mxu1 %vm2355_vm11, %v2354_v48 }
 0x446   : > { %2128 = vmatpush3.msra.mxu1 %v1030_v47  ;;  %2122 = vmatprep.subr.mxu0 %v2354_v48  ;;  %v1110_v55 = vld [vmem:[%s2525_s13] sm:$0xf] }
 0x447   : > { %2124 = vmatprep.mubr.msk.f32.mxu0 %vm2355_vm11, %v2354_v48  ;;  %2123 = vmatpush3.msra.mxu0 %v949_v49 }
 0x448   : > { %2125 = vmatmul.mubr.msk.f32.vlgmr.msra.gmra.mxu0 %vm950_vm12, %v2559_v19 }
 0x4b6   : > { %v1032_v50 = vpop.permute.xlu0 %1031 }
 0x4b7   : > { %2130 = vmatmul.mubr.msk.f32.vlgmr.msra.gmra.mxu1 %vm950_vm12, %v1032_v50 }
 0x508   : > { %v1020_v51 = vpop.f32.mrf.mxu0 }
 0x509   : > { %1025 = vrot.lane.b32.xlu0 %v1020_v51, %s2356_s28 }
 0x50a   : > { %v2126_v52 = vpop.f32.mrf.mxu0 }
 0x577   : > { %v1101_v53 = vpop.f32.mrf.mxu1 }
 0x578   : > { %1106 = vrot.lane.b32.xlu1 %v1101_v53, %s2356_s28 }
 0x579   : > { %v2131_v54 = vpop.f32.mrf.mxu1 }
 0x57b   : > { %v1026_v56 = vpop.permute.xlu0 %1025 }
 0x57c   : > { %1112 = vrot.lane.b32.xlu1 %v1110_v55, %s2356_s28  ;;  %1029 = vst.msk [vmem:[#allocation2] sm:$0xf] %vm1028_vm13, %v1026_v56 }
 0x5ea   : > { %v1107_v57 = vpop.permute.xlu1 %1106 }
 0x5eb   : > { %1109 = vst.msk [vmem:[#allocation2 + $0x8] sm:$0xf] %vm1028_vm13, %v1107_v57 }
 0x5ee   : > { %v1113_v58 = vpop.permute.xlu1 %1112 }
 0x5ef   : > { %1115 = vst.msk [vmem:[#allocation2 + $0x10] sm:$0xf] %vm1028_vm13, %v1113_v58 }
 0x5f0 PF: > { %v1117_v60 = vld [vmem:[#allocation2] sm:$0xff]  ;;  %2132 = vmatprep.subr.mxu0 %v2341_v0  ;;  %2141 = vmatprep.subr.mxu1 %v2341_v0  ;;  %s2357_s24 = smov 127   ;;  %s2358_s13 = smov 126   ;;  %vm1134_vm14 = vcmask 195584   ;;  %v2004_v10 = vld [vmem:[%s2538_s29 + $0x8] sm:$0xf] }
 0x5f1   : > { %1125 = vrot.lane.b32.xlu1 %v1117_v60, %s2357_s24  ;;  %2138 = vmatprep.mubr.msk.f32.mxu0 %vm2342_vm4, %v2341_v0  ;;  %v1116_v62 = vld [vmem:[%s2538_s29] sm:$0xf]  ;;  %s2359_s15 = smov 118   ;;  %s2360_s12 = smov 117   ;;  %v2001_v5 = vld [vmem:[%s2538_s29 + $0x4] sm:$0xf] }
 0x5f2   : > { %v1118_v61 = vld [vmem:[#allocation2 + $0x8] sm:$0xff]  ;;  %2147 = vmatprep.mubr.msk.f32.mxu1 %vm2342_vm4, %v2341_v0  ;;  %2278 = vset.pattern.permute.xlu0 %v2343_v12  ;;  %s2361_s19 = smov 116   ;;  %s2362_s26 = smov 108   ;;  %v1876_v63 = vld [vmem:[%s2530_s16] sm:$0xf]  ;;  %vm1883_vm15 = vcmask 650240  }
 0x5f3   : > { %s2363_s22 = smov 107   ;;  %s2364_s25 = smov 106   ;;  %v2006_v13 = vld [vmem:[%s2538_s29 + $0xc] sm:$0xf]  ;;  %v2008_v16 = vld [vmem:[%s2538_s29 + $0x10] sm:$0xf] }
 0x5f4   : > { %v2010_v19 = vld [vmem:[%s2538_s29 + $0x14] sm:$0xf]  ;;  %v2012_v24 = vld [vmem:[%s2538_s29 + $0x18] sm:$0xf]  ;;  %v2014_v27 = vld [vmem:[%s2538_s29 + $0x1c] sm:$0xf] }
 0x5f5   : > { %v2016_v32 = vld [vmem:[%s2538_s29 + $0x20] sm:$0xf]  ;;  %s2019_s16 = sshll.u32 %s2447_s21, 6  ;;  %s1899_s29 = sshll.u32 %s405_s14, 4  ;;  %s1900_s29 = int_to_ptr.vmem [resolvable:$true] %s1899_s29 }
 0x5f6   : > { %v1119_v59 = vld [vmem:[#allocation2 + $0x10] sm:$0xff]  ;;  %s1897_s28 = scalar_lea.hbm %s2706_s11, %s2019_s16  ;;  %s2365_s21 = smov [#allocation3]  }
 0x5f7   : > { %1129 = vrot.lane.b32.xlu0 %v1119_v59, %s2357_s24  ;;  %2142 = vmatpush3.msra.mxu1 %v1119_v59 }
 0x5f8   : > { %2143 = vmatprep.subr.mxu1 %v2341_v0  ;;  %1287 = vrot.lane.b32.xlu1 %v1119_v59, %s2358_s13 }
 0x5f9   : > { %2144 = vmatpush3.msra.mxu1 %v1118_v61 }
 0x5fa   : > { %2145 = vmatprep.subr.mxu1 %v2341_v0 }
 0x5fb   : > { %1127 = vrot.lane.b32.xlu0 %v1118_v61, %s2357_s24  ;;  %2146 = vmatpush3.msra.mxu1 %v1117_v60  ;;  %s2720_s24 = sand.u32 1, %s2331_s18  }
 0x5fc   : > { %2159 = vmatprep.subr.mxu1 %v2341_v0  ;;  %2148 = vmatmul.mubr.msk.f32.vlgmr.msra.gmra.mxu1 %vm1134_vm14, %v1116_v62 }
 0x5fd   : > { %1283 = vrot.lane.b32.xlu1 %v1117_v60, %s2358_s13  ;;  %2165 = vmatprep.mubr.msk.f32.mxu1 %vm2342_vm4, %v2341_v0 }
 0x5ff   : > { %1285 = vrot.lane.b32.xlu0 %v1118_v61, %s2358_s13  ;;  %s1886_s13 = scalar_lea.sflag [#allocation4], %s2720_s24 }
 0x601   : > { %1370 = vrot.lane.b32.xlu1 %v1118_v61, %s2359_s15 }
 0x603   : > { %1372 = vrot.lane.b32.xlu0 %v1119_v59, %s2359_s15 }
 0x605   : > { %1368 = vrot.lane.b32.xlu1 %v1117_v60, %s2359_s15  ;;  %s2279_s15 = scalar_lea.vmem %s1900_s29, 64 }
 0x606   : > { %p2280_p0 = scmp.ne.s32.totalorder %s1900_s29, %s2279_s15 }
 0x607   : > { %1457 = vrot.lane.b32.xlu0 %v1119_v59, %s2360_s12 }
 0x608   : > { %p2281_p1 = pnand %p2280_p0, %p2464_p5 }
 0x609   : > { %1453 = vrot.lane.b32.xlu1 %v1117_v60, %s2360_s12 }
 0x60a   : > { %p2282_p2 = pneg %p2281_p1 }
 0x60b   : > { %1455 = vrot.lane.b32.xlu0 %v1118_v61, %s2360_s12  ;;  %s2283_s12 = sshll.u32 %s2365_s21, 4  ;;  %s2284_s12 = int_to_ptr.vmem [resolvable:$false] %s2283_s12 }
 0x60c   : > { %p2286_p3 = scmp.lt.s32.totalorder %s1900_s29, %s2284_s12 }
 0x60d   : > { %1540 = vrot.lane.b32.xlu1 %v1118_v61, %s2361_s19 }
 0x60f   : > { %1542 = vrot.lane.b32.xlu0 %v1119_v59, %s2361_s19 }
 0x611   : > { %1538 = vrot.lane.b32.xlu1 %v1117_v60, %s2361_s19  ;;  %s2285_s19 = scalar_lea.vmem %s2284_s12, 128 }
 0x612   : > { %p2287_p4 = scmp.lt.s32.totalorder %s2285_s19, %s2279_s15 }
 0x613   : > { %1627 = vrot.lane.b32.xlu0 %v1119_v59, %s2362_s26 }
 0x614   : > { %p2288_p7 = por %p2287_p4, %p2286_p3 }
 0x615   : > { %1623 = vrot.lane.b32.xlu1 %v1117_v60, %s2362_s26 }
 0x616   : > { %p2289_p8 = pnand %p2288_p7, %p2282_p2 }
 0x617   : > { %1625 = vrot.lane.b32.xlu0 %v1118_v61, %s2362_s26 }
 0x619   : > { %1710 = vrot.lane.b32.xlu1 %v1118_v61, %s2363_s22 }
 0x61b   : > { %1712 = vrot.lane.b32.xlu0 %v1119_v59, %s2363_s22 }
 0x61d   : > { %1708 = vrot.lane.b32.xlu1 %v1117_v60, %s2363_s22 }
 0x61f   : > { %1797 = vrot.lane.b32.xlu0 %v1119_v59, %s2364_s25 }
 0x621   : > { %1793 = vrot.lane.b32.xlu1 %v1117_v60, %s2364_s25 }
 0x623   : > { %1795 = vrot.lane.b32.xlu0 %v1118_v61, %s2364_s25 }
 0x627   : > { %1879 = vperm.xlu0 %2278, %v1876_v63  }
 0x663   : > { %v1126_v2 = vpop.permute.xlu1 %1125 }
 0x669   : > { %v1130_v1 = vpop.permute.xlu0 %1129 }
 0x66a   : > { %2133 = vmatpush3.msra.mxu0 %v1130_v1  ;;  %v1288_v4 = vpop.permute.xlu1 %1287 }
 0x66b   : > { %2134 = vmatprep.subr.mxu0 %v2341_v0 }
 0x66d   : > { %v1128_v3 = vpop.permute.xlu0 %1127 }
 0x66e   : > { %2135 = vmatpush3.msra.mxu0 %v1128_v3 }
 0x66f   : > { %2136 = vmatprep.subr.mxu0 %v2341_v0  ;;  %v1284_v7 = vpop.permute.xlu1 %1283 }
 0x670   : > { %2137 = vmatpush3.msra.mxu0 %v1126_v2 }
 0x671   : > { %v1286_v6 = vpop.permute.xlu0 %1285  ;;  %2150 = vmatprep.subr.mxu0 %v2341_v0  ;;  %2139 = vmatmul.mubr.msk.f32.vlgmr.msra.gmra.mxu0 %vm1134_vm14, %v2001_v5 }
 0x672   : > { %2151 = vmatpush3.msra.mxu0 %v1288_v4  ;;  %2156 = vmatprep.mubr.msk.f32.mxu0 %vm2342_vm4, %v2341_v0 }
 0x673   : > { %2152 = vmatprep.subr.mxu0 %v2341_v0  ;;  %v1371_v9 = vpop.permute.xlu1 %1370 }
 0x674   : > { %2153 = vmatpush3.msra.mxu0 %v1286_v6 }
 0x675   : > { %v1373_v8 = vpop.permute.xlu0 %1372  ;;  %2154 = vmatprep.subr.mxu0 %v2341_v0 }
 0x676   : > { %2155 = vmatpush3.msra.mxu0 %v1284_v7  ;;  %2160 = vmatpush3.msra.mxu1 %v1373_v8 }
 0x677   : > { %2161 = vmatprep.subr.mxu1 %v2341_v0  ;;  %2168 = vmatprep.subr.mxu0 %v2341_v0  ;;  %v1369_v12 = vpop.permute.xlu1 %1368 }
 0x678   : > { %2162 = vmatpush3.msra.mxu1 %v1371_v9  ;;  %2157 = vmatmul.mubr.msk.f32.vlgmr.msra.gmra.mxu0 %vm1134_vm14, %v2004_v10 }
 0x679   : > { %v1458_v11 = vpop.permute.xlu0 %1457  ;;  %2163 = vmatprep.subr.mxu1 %v2341_v0  ;;  %2174 = vmatprep.mubr.msk.f32.mxu0 %vm2342_vm4, %v2341_v0 }
 0x67a   : > { %2169 = vmatpush3.msra.mxu0 %v1458_v11  ;;  %2164 = vmatpush3.msra.mxu1 %v1369_v12 }
 0x67b   : > { %2170 = vmatprep.subr.mxu0 %v2341_v0  ;;  %2177 = vmatprep.subr.mxu1 %v2341_v0  ;;  %v1454_v15 = vpop.permute.xlu1 %1453 }
 0x67c   : > { %2166 = vmatmul.mubr.msk.f32.vlgmr.msra.gmra.mxu1 %vm1134_vm14, %v2006_v13 }
 0x67d   : > { %v1456_v14 = vpop.permute.xlu0 %1455  ;;  %2183 = vmatprep.mubr.msk.f32.mxu1 %vm2342_vm4, %v2341_v0 }
 0x67e   : > { %2171 = vmatpush3.msra.mxu0 %v1456_v14 }
 0x67f   : > { %2172 = vmatprep.subr.mxu0 %v2341_v0  ;;  %v1541_v18 = vpop.permute.xlu1 %1540 }
 0x680   : > { %2173 = vmatpush3.msra.mxu0 %v1454_v15 }
 0x681   : > { %v1543_v17 = vpop.permute.xlu0 %1542  ;;  %2186 = vmatprep.subr.mxu0 %v2341_v0  ;;  %2175 = vmatmul.mubr.msk.f32.vlgmr.msra.gmra.mxu0 %vm1134_vm14, %v2008_v16 }
 0x682   : > { %2178 = vmatpush3.msra.mxu1 %v1543_v17  ;;  %2192 = vmatprep.mubr.msk.f32.mxu0 %vm2342_vm4, %v2341_v0 }
 0x683   : > { %2179 = vmatprep.subr.mxu1 %v2341_v0  ;;  %v1539_v21 = vpop.permute.xlu1 %1538 }
 0x684   : > { %2180 = vmatpush3.msra.mxu1 %v1541_v18 }
 0x685   : > { %v1628_v20 = vpop.permute.xlu0 %1627  ;;  %2181 = vmatprep.subr.mxu1 %v2341_v0 }
 0x686   : > { %2187 = vmatpush3.msra.mxu0 %v1628_v20  ;;  %2182 = vmatpush3.msra.mxu1 %v1539_v21 }
 0x687   : > { %2188 = vmatprep.subr.mxu0 %v2341_v0  ;;  %2184 = vmatmul.mubr.msk.f32.vlgmr.msra.gmra.mxu1 %vm1134_vm14, %v2010_v19  ;;  %v1624_v23 = vpop.permute.xlu1 %1623 }
 0x688   : > { %2195 = vmatprep.subr.mxu1 %v2341_v0  ;;  %2201 = vmatprep.mubr.msk.f32.mxu1 %vm2342_vm4, %v2341_v0 }
 0x689   : > { %v1626_v22 = vpop.permute.xlu0 %1625 }
 0x68a   : > { %2189 = vmatpush3.msra.mxu0 %v1626_v22 }
 0x68b   : > { %2190 = vmatprep.subr.mxu0 %v2341_v0  ;;  %v1711_v26 = vpop.permute.xlu1 %1710 }
 0x68c   : > { %2191 = vmatpush3.msra.mxu0 %v1624_v23 }
 0x68d   : > { %v1713_v25 = vpop.permute.xlu0 %1712  ;;  %2193 = vmatmul.mubr.msk.f32.vlgmr.msra.gmra.mxu0 %vm1134_vm14, %v2012_v24  ;;  %2204 = vmatprep.subr.mxu0 %v2341_v0 }
 0x68e   : > { %2196 = vmatpush3.msra.mxu1 %v1713_v25  ;;  %2210 = vmatprep.mubr.msk.f32.mxu0 %vm2342_vm4, %v2341_v0 }
 0x68f   : > { %2197 = vmatprep.subr.mxu1 %v2341_v0  ;;  %v1709_v29 = vpop.permute.xlu1 %1708 }
 0x690   : > { %2198 = vmatpush3.msra.mxu1 %v1711_v26 }
 0x691   : > { %v1798_v28 = vpop.permute.xlu0 %1797  ;;  %2199 = vmatprep.subr.mxu1 %v2341_v0 }
 0x692   : > { %2200 = vmatpush3.msra.mxu1 %v1709_v29  ;;  %2205 = vmatpush3.msra.mxu0 %v1798_v28 }
 0x693   : > { %2202 = vmatmul.mubr.msk.f32.vlgmr.msra.gmra.mxu1 %vm1134_vm14, %v2014_v27  ;;  %2206 = vmatprep.subr.mxu0 %v2341_v0  ;;  %v1794_v31 = vpop.permute.xlu1 %1793 }
 0x695   : > { %v1796_v30 = vpop.permute.xlu0 %1795 }
 0x696   : > { %2207 = vmatpush3.msra.mxu0 %v1796_v30 }
 0x697   : > { %2208 = vmatprep.subr.mxu0 %v2341_v0 }
 0x698   : > { %2209 = vmatpush3.msra.mxu0 %v1794_v31 }
 0x699   : > { %2211 = vmatmul.mubr.msk.f32.vlgmr.msra.gmra.mxu0 %vm1134_vm14, %v2016_v32 }
 0x6a2   : > { %v1880_v56 = vpop.permute.xlu0 %1879 }
 0x6bc   : > { %v1277_v33 = vpop.f32.mrf.mxu1 }
 0x6be   : > { %v2149_v34 = vpop.f32.mrf.mxu1 }
 0x731   : > { %v1204_v35 = vpop.f32.mrf.mxu0 }
 0x732   : > { %v1278_v42 = vadd.f32 %v1277_v33, %v1204_v35 }
 0x733   : > { %v2140_v36 = vpop.f32.mrf.mxu0 }
 0x738   : > { %v1361_v37 = vpop.f32.mrf.mxu0 }
 0x739   : > { %v1365_v44 = vadd.f32 %v1361_v37, %v1278_v42 }
 0x73a   : > { %v2158_v38 = vpop.f32.mrf.mxu0 }
 0x73c   : > { %v1446_v39 = vpop.f32.mrf.mxu1 }
 0x73d   : > { %v1450_v0 = vadd.f32 %v1446_v39, %v1365_v44 }
 0x73e   : > { %v2167_v40 = vpop.f32.mrf.mxu1 }
 0x741   : > { %v1531_v41 = vpop.f32.mrf.mxu0 }
 0x742   : > { %v1535_v48 = vadd.f32 %v1531_v41, %v1450_v0 }
 0x743   : > { %v2176_v43 = vpop.f32.mrf.mxu0 }
 0x747   : > { %v1616_v45 = vpop.f32.mrf.mxu1 }
 0x748   : > { %v1620_v50 = vadd.f32 %v1616_v45, %v1535_v48 }
 0x749   : > { %v2185_v46 = vpop.f32.mrf.mxu1 }
 0x74d   : > { %v1701_v47 = vpop.f32.mrf.mxu0 }
 0x74e   : > { %v1705_v53 = vadd.f32 %v1701_v47, %v1620_v50 }
 0x74f   : > { %v2194_v49 = vpop.f32.mrf.mxu0 }
 0x753   : > { %v1786_v51 = vpop.f32.mrf.mxu1 }
 0x754   : > { %v1790_v54 = vadd.f32 %v1786_v51, %v1705_v53 }
 0x755   : > { %v2203_v52 = vpop.f32.mrf.mxu1 }
 0x759   : > { %v1871_v55 = vpop.f32.mrf.mxu0 }
 0x75a   : > { %v1875_v57 = vadd.f32 %v1871_v55, %v1790_v54 }
 0x75b   : > { %v2212_v58 = vpop.f32.mrf.mxu0 }
 0x75c   : > { %v1882_v59 = vadd.f32 %v1880_v56, %v1875_v57 }
 0x75e   : > { %1884 = vst.msk [vmem:[%s405_s14] sm:$0xf] %vm1883_vm15, %v1882_v59 }
 0x75f   : > { %2292 = shalt.err (!%p2289_p8)
}
 0x760   : > { %s2293_s26 = scalar_lea.hbm %s1897_s28, 64  ;;  %s2297_s22 = scalar_lea.hbm %s2706_s11, 192 }
 0x761   : > { %p2294_p9 = scmp.ne.s32.totalorder %s1897_s28, %s2293_s26  ;;  %p2298_p12 = scmp.lt.s32.totalorder %s1897_s28, %s2706_s11 }
 0x762   : > { %p2299_p13 = scmp.lt.s32.totalorder %s2297_s22, %s2293_s26 }
 0x763   : > { %p2295_p10 = pnand %p2294_p9, %p2464_p5 }
 0x764   : > { %p2300_p0 = por %p2299_p13, %p2298_p12 }
 0x765   : > { %p2296_p11 = pneg %p2295_p10 }
 0x767   : > { %p2301_p1 = pnand %p2300_p0, %p2296_p11 }
 0x769   : > { %2304 = shalt.err (!%p2301_p1)
}
 0x76a   : > { %2214 = dma.vmem_to_hbm [thread:$0]  (%p2464_p5), %s1900_s29, 64, %s1897_s28, %s1886_s13  }
 0x76b PF: > { %s2721_s17 = sld [smem:[#allocation6_spill]]  ;;  %p2220_p2 = scmp.ge.s32.totalorder %s2339_s20, 2 }
 0x76d   : > { %p2217_p3 = pnand %p2220_p2, %p2468_p6 }
 0x76f   : > { %p2218_p4 = pneg %p2217_p3 }
 0x771   : > { %s1911_s24 = sand.u32 1, %s2721_s17  }
 0x772   : > { %s1912_s15 = scalar_lea.sflag [#allocation4], %s1911_s24 }
 0x773   : > { %2322 = dma.done.wait (%p2218_p4), %s1912_s15, 64  }
 0x774   : > { %2324 = vsyncadd (%p2218_p4), %s1912_s15, 4294967232  ;;  %s2723_s20 = sld [smem:[#allocation8_spill]]  ;;  %s2726_s17 = smov %s2331_s18 }
 0x775   : > { %s2724_s21 = sld [smem:[#allocation7_spill]] }
 0x776   : > { %s2725_s19 = sld [smem:[#allocation9_spill]] }
 0x77a   : > { %p21_p7 = scmp.ge.s32.totalorder %s2723_s20, 5  }
 0x77b   : > { %s2727_s18 = smov %s2724_s21 }
 0x77c   :  { %23 = sbr.rel (!%p21_p7) target bundleno = 3 (0x3), region = 125 }
 0x781   :  { %1917 = vsyncpa [#allocation4], 1 }
 0x782   :  { %1919 = vsyncpa [#allocation4 + $0x1], 1 }

</bundles_post_ra>
